<compile_context>
chip_gen: v7x
topology: tpu7x:2x2x1
jax: 0.10.0
libtpu: 0.0.40
codegen_flags: <defaults>
</compile_context>

<pallas_src>
import jax
import jax.numpy as jnp
from jax.experimental import pallas as pl
from jax.experimental.pallas import tpu as pltpu


def _cdiv(a: int, b: int) -> int:
    return (a + b - 1) // b


def _round_up(x: int, m: int) -> int:
    return _cdiv(x, m) * m


def _num_tensorcores() -> int:
    """Best-effort TensorCores-per-device count (v7x: 2, v5e/v6e: 1)."""
    try:
        info = pltpu.get_tpu_info()
        for attr in ("num_cores", "core_count", "num_tensorcores"):
            n = getattr(info, attr, None)
            if isinstance(n, int) and n > 0:
                return n
    except Exception:
        pass
    try:
        kind = jax.devices()[0].device_kind.lower()
        if "v7" in kind:
            return 2
    except Exception:
        pass
    return 1


def _volatility_kernel(gam_ref, t_ref, g_ref):
    # gam_ref (SMEM, f32[3]): [gamma_0, dg, sqrt(dg)]
    g0 = gam_ref[0]
    dg = gam_ref[1]
    sqrt_dg = gam_ref[2]
    # sqrt(sigmoid(x) * dg) == sqrt(dg) * rsqrt(1 + exp(-x)) : 2 EUP pushes/vreg.
    x = g0 + dg * t_ref[...]
    g_ref[...] = (sqrt_dg * jax.lax.rsqrt(1.0 + jnp.exp(-x))).astype(g_ref.dtype)


_LANES = 1024  # fixed lane-dense block width (multiple of 128)


def _linear_volatility_g(t, gamma_0, gamma_1):
    t = jnp.asarray(t, jnp.float32)
    orig_shape = t.shape
    N = t.size

    g0 = jnp.asarray(gamma_0, jnp.float32)
    dg = jnp.asarray(gamma_1, jnp.float32) - g0
    # NaN for dg < 0 mirrors torch.sqrt of a negative value.
    gammas = jnp.stack([g0, dg, jnp.sqrt(dg)])

    if N == 0:
        return jnp.zeros(orig_shape, jnp.float32)

    # Flat (rows, L) view: lane-dense regardless of the input's trailing dim.
    L = min(_LANES, _round_up(N, 128))
    rows = _cdiv(N, L)
    Npad = rows * L

    flat = t.reshape(-1)
    if Npad != N:
        flat = jnp.pad(flat, (0, Npad - N))          # only the tail remainder
    t2 = flat.reshape(rows, L)

    # ~4 MiB f32 per row-block (in+out double-buffered -> ~16 MiB VMEM).
    rows_budget = max(8, ((4 << 20) // (4 * L)) // 8 * 8)
    n_blocks = _cdiv(rows, rows_budget)
    num_cores = _num_tensorcores()
    if num_cores > 1 and rows > 8 * num_cores:
        # Megacore (v7x): >=1 block per TC, block count a multiple of #cores.
        n_blocks = _round_up(max(n_blocks, num_cores), num_cores)
    if n_blocks > 1:
        tb = _round_up(_cdiv(rows, n_blocks), 8)
        n_blocks = _cdiv(rows, tb)                   # ragged last block is masked by Pallas
    else:
        tb = rows                                    # single block == full array dims

    cost = pl.CostEstimate(
        flops=4 * Npad,
        transcendentals=2 * Npad,
        bytes_accessed=8 * Npad,
    )

    g2 = pl.pallas_call(
        _volatility_kernel,
        out_shape=jax.ShapeDtypeStruct((rows, L), jnp.float32),
        grid_spec=pltpu.PrefetchScalarGridSpec(
            num_scalar_prefetch=1,
            grid=(n_blocks,),
            in_specs=[pl.BlockSpec((tb, L), lambda i, gam: (i, 0))],
            out_specs=pl.BlockSpec((tb, L), lambda i, gam: (i, 0)),
        ),
        compiler_params=pltpu.CompilerParams(
            dimension_semantics=("parallel",),
            vmem_limit_bytes=32 << 20,
        ),
        cost_estimate=cost,
    )(gammas, t2)

    g_flat = g2.reshape(-1)
    if Npad != N:
        g_flat = g_flat[:N]
    return g_flat.reshape(orig_shape)


def linear_volatility(t, d, gamma_0=-10.0, gamma_1=10.0):
    """Returns a list of d arrays, each = sqrt(sigmoid(g0 + (g1-g0)*t) * (g1-g0))."""
    g = _linear_volatility_g(t, gamma_0, gamma_1)
    # PyTorch returns d references to the same tensor; mirror that here.
    return [g for _ in range(d)]


def _reference(t, d, gamma_0=-10.0, gamma_1=10.0):
    dg = gamma_1 - gamma_0
    s2 = jax.nn.sigmoid(gamma_0 + dg * t)
    g = jnp.sqrt(s2 * dg)
    return [g for _ in range(d)]


if __name__ == "__main__":
    key = jax.random.PRNGKey(0)
    d = 3                                   # module's dimensionality parameter
    B, T = 16, 256                          # small, fully aligned time grid
    t = jax.random.uniform(key, (B, T), dtype=jnp.float32)

    outs = linear_volatility(t, d)
    outs = [jax.block_until_ready(o) for o in outs]

    refs = _reference(t, d)
    for o, r in zip(outs, refs):
        assert o.shape == r.shape and o.dtype == r.dtype
        assert jnp.allclose(o, r, atol=1e-5, rtol=1e-5)

    # Unaligned total size: exercises the tail-pad + output-trim path.
    t_odd = jax.random.uniform(jax.random.PRNGKey(1), (5, 200), dtype=jnp.float32)
    o_odd = jax.block_until_ready(linear_volatility(t_odd, 1)[0])
    r_odd = _reference(t_odd, 1)[0]
    assert jnp.allclose(o_odd, r_odd, atol=1e-5, rtol=1e-5)

    # Narrow trailing dim + multiple row blocks: exercises the flat (rows, L)
    # view and (on multi-core parts) the megacore split.
    t_long = jax.random.uniform(jax.random.PRNGKey(2), (4096, 8), dtype=jnp.float32)
    o_long = jax.block_until_ready(linear_volatility(t_long, 1)[0])
    r_long = _reference(t_long, 1)[0]
    assert jnp.allclose(o_long, r_long, atol=1e-5, rtol=1e-5)

    print("KERNEL_OK")
</pallas_src>

<mosaic_0001>
module attributes {stable_mosaic.version = 11 : i64} {
  func.func @_volatility_kernel(%arg0: i32, %arg1: memref<3xf32, #tpu.memory_space<smem>>, %arg2: memref<4x1024xf32, #tpu.memory_space<vmem>>, %arg3: memref<4x1024xf32, #tpu.memory_space<vmem>>) attributes {dimension_semantics = [#tpu.dimension_semantics<parallel>], iteration_bounds = array<i64: 1>, scalar_prefetch = 1 : i64, scratch_operands = 0 : i64, tpu.core_type = #tpu.core_type<tc>, window_params = [{transform_indices = @transform_0, window_bounds = array<i64: 4, 1024>}, {transform_indices = @transform_1, window_bounds = array<i64: 4, 1024>}]} {
    %c0 = arith.constant 0 : index
    %0 = memref.load %arg1[%c0] : memref<3xf32, #tpu.memory_space<smem>>
    %c1 = arith.constant 1 : index
    %1 = memref.load %arg1[%c1] : memref<3xf32, #tpu.memory_space<smem>>
    %c2 = arith.constant 2 : index
    %2 = memref.load %arg1[%c2] : memref<3xf32, #tpu.memory_space<smem>>
    %c0_0 = arith.constant 0 : index
    %c0_1 = arith.constant 0 : index
    %3 = vector.load %arg2[%c0_0, %c0_1] : memref<4x1024xf32, #tpu.memory_space<vmem>>, vector<4x1024xf32>
    %4 = vector.broadcast %1 : f32 to vector<4x1024xf32>
    %5 = arith.mulf %4, %3 : vector<4x1024xf32>
    %6 = vector.broadcast %0 : f32 to vector<4x1024xf32>
    %7 = arith.addf %6, %5 : vector<4x1024xf32>
    %cst = arith.constant 0.000000e+00 : f32
    %8 = vector.broadcast %cst : f32 to vector<4x1024xf32>
    %9 = arith.subf %8, %7 : vector<4x1024xf32>
    %10 = math.exp %9 : vector<4x1024xf32>
    %cst_2 = arith.constant 1.000000e+00 : f32
    %11 = vector.broadcast %cst_2 : f32 to vector<4x1024xf32>
    %12 = arith.addf %11, %10 : vector<4x1024xf32>
    %13 = math.rsqrt %12 : vector<4x1024xf32>
    %14 = vector.broadcast %2 : f32 to vector<4x1024xf32>
    %15 = arith.mulf %14, %13 : vector<4x1024xf32>
    %c0_3 = arith.constant 0 : index
    %c0_4 = arith.constant 0 : index
    %16 = vector.load %arg3[%c0_3, %c0_4] : memref<4x1024xf32, #tpu.memory_space<vmem>>, vector<4x1024xf32>
    tpu.vector_store %arg3[%c0_3, %c0_4], %15 {strides = array<i32>} : memref<4x1024xf32, #tpu.memory_space<vmem>>, vector<4x1024xf32>,
    return
  }
  func.func @transform_0(%arg0: i32, %arg1: memref<3xf32, #tpu.memory_space<smem>>) -> (i32, i32) {
    %c0_i32 = arith.constant 0 : i32
    %c0_i32_0 = arith.constant 0 : i32
    return %arg0, %c0_i32 : i32, i32
  }
  func.func @transform_1(%arg0: i32, %arg1: memref<3xf32, #tpu.memory_space<smem>>) -> (i32, i32) {
    %c0_i32 = arith.constant 0 : i32
    %c0_i32_0 = arith.constant 0 : i32
    return %arg0, %c0_i32 : i32, i32
  }
}

</mosaic_0001>

<bundles_post_ra>
// kernel: tpu_custom_call.1
= control target key start
LH: loop header
LB: loop body
LE: loop exit
PB: predicated region body
PF: predicated region fallthrough
CT: control target
= control target key end

     0   :  { %s222_s0 = inlined_call_operand.hbm [shape: f32[3], index: 0, kind: input, shape index: {}]   ;;  %s223_s1 = inlined_call_operand.hbm [shape: f32[4,1024], index: 1, kind: input, shape index: {}]   ;;  %s224_s2 = inlined_call_operand.hbm [shape: f32[4,1024], index: 2, kind: output, shape index: {}]  }
   0x1   :  { %s108_s11 = scalar_lea.hbm %s222_s0, 16 }
   0x2   :  { %p109_p0 = scmp.ne.s32.totalorder %s222_s0, %s108_s11  ;;  %p112_p1 = scmp.lt.u32.totalorder %s108_s11, %s222_s0 }
   0x4   :  { %p114_p2 = pnand %p112_p1, %p109_p0 }
   0x6   :  { %117 = shalt.err (!%p114_p2)  }
   0x7   :  { %s168_s16 = smov [#allocation3]  }
   0x8   :  { %8 = dma.hbm_to_smem %s222_s0, 16, %s168_s16, [#allocation2] }
   0x9   :  { %162 = dma.done.wait [#allocation2], 16 }
   0xa   :  { %163 = vsyncadd [#allocation2], 4294967280 }
   0xb   :  { %10 = sfence }
   0xc   :  { %11 = vsyncpa [#allocation5], 0 }
   0xd   :  { %12 = vsyncpa [#allocation6], 0  ;;  %s169_s19 = smov [#allocation4]   ;;  %s118_s23 = scalar_lea.hbm %s223_s1, 512 }
   0xe   :  { %s19_s20 = sshll.u32 %s169_s19, 4  ;;  %p119_p3 = scmp.ne.s32.totalorder %s223_s1, %s118_s23  ;;  %s20_s20 = int_to_ptr.vmem [resolvable:$true] %s19_s20 }
   0xf   :  { %p122_p4 = scmp.lt.u32.totalorder %s118_s23, %s223_s1 }
  0x11   :  { %p124_p5 = pnand %p122_p4, %p119_p3 }
  0x13   :  { %127 = shalt.err (!%p124_p5)
}
  0x14   :  { %s128_s0 = scalar_lea.vmem %s20_s20, 512  ;;  %p133_p7 = scmp.lt.s32.totalorder %s20_s20, %s20_s20 }
  0x15   :  { %p129_p6 = scmp.ne.s32.totalorder %s20_s20, %s128_s0  ;;  %p134_p8 = scmp.lt.s32.totalorder %s128_s0, %s128_s0 }
  0x17   :  { %p135_p9 = por %p134_p8, %p133_p7 }
  0x19   :  { %p136_p10 = pnand %p135_p9, %p129_p6 }
  0x1b   :  { %139 = shalt.err (!%p136_p10)
}
  0x1c   :  { %22 = dma.hbm_to_vmem [thread:$0]  %s223_s1, 512, %s20_s20, [#allocation5]  }
  0x1d   :  { %164 = dma.done.wait [#allocation5], 512  }
  0x1e   :  { %165 = vsyncadd [#allocation5], 4294966784  ;;  %s26_s30 = sld [smem:[#allocation3]]  ;;  %s87_s3 = sld [smem:[#allocation3 + $0x1]]  ;;  %v29_v0 = vld [vmem:[#allocation4] sm:$0xff]  ;;  %v30_v3 = vld [vmem:[#allocation4 + $0x8] sm:$0xff] }
  0x1f   :  { %v31_v4 = vld [vmem:[#allocation4 + $0x10] sm:$0xff]  ;;  %v32_v8 = vld [vmem:[#allocation4 + $0x18] sm:$0xff]  ;;  %s88_s1 = sld [smem:[#allocation3 + $0x2]]  ;;  %s170_s4 = smov [#allocation7]  }
  0x20   :  { %s78_s5 = sshll.u32 %s170_s4, 4  ;;  %s79_s5 = int_to_ptr.vmem [resolvable:$true] %s78_s5 }
  0x21   :  { %s140_s6 = scalar_lea.vmem %s79_s5, 512  ;;  %p145_p12 = scmp.lt.s32.totalorder %s79_s5, %s79_s5 }
  0x22   :  { %p141_p11 = scmp.ne.s32.totalorder %s79_s5, %s140_s6  ;;  %p146_p13 = scmp.lt.s32.totalorder %s140_s6, %s140_s6 }
  0x24   :  { %v33_v1 = vstv %s87_s3  ;;  %v38_v2 = vstv %s26_s30  ;;  %p147_p0 = por %p146_p13, %p145_p12 }
  0x25   :  { %v34_v5 = vmul.f32 %v33_v1, %v29_v0  ;;  %v35_v6 = vmul.f32 %v33_v1, %v30_v3  ;;  %v36_v7 = vmul.f32 %v33_v1, %v31_v4  ;;  %v37_v9 = vmul.f32 %v33_v1, %v32_v8 }
  0x26   :  { %v63_v30 = vstv %s88_s1  ;;  %p148_p1 = pnand %p147_p0, %p141_p11 }
  0x27   :  { %v39_v10 = vadd.f32 %v38_v2, %v34_v5  ;;  %v40_v11 = vadd.f32 %v38_v2, %v35_v6  ;;  %v41_v12 = vadd.f32 %v38_v2, %v36_v7  ;;  %v42_v13 = vadd.f32 %v38_v2, %v37_v9 }
  0x29   :  { %v43_v14 = vsub.f32 0.0, %v39_v10  ;;  %v44_v15 = vsub.f32 0.0, %v40_v11  ;;  %v45_v16 = vsub.f32 0.0, %v41_v12  ;;  %v46_v17 = vsub.f32 0.0, %v42_v13 }
  0x2b   :  { %v47_v18 = vmul.f32 1.442695, %v43_v14  ;;  %v49_v19 = vmul.f32 1.442695, %v44_v15  ;;  %v51_v20 = vmul.f32 1.442695, %v45_v16 }
  0x2c   :  { %v53_v21 = vmul.f32 1.442695, %v46_v17 }
  0x2d   :  { %92 = vpow2.f32 %v47_v18 }
  0x2e   :  { %94 = vpow2.f32 %v49_v19 }
  0x2f   :  { %96 = vpow2.f32 %v51_v20 }
  0x30   :  { %98 = vpow2.f32 %v53_v21 }
  0x37   :  { %v93_v22 = vpop.eup %92 }
  0x38   :  { %v95_v23 = vpop.eup %94  ;;  %v55_v24 = vadd.f32 1.0, %v93_v22 }
  0x39   :  { %v97_v25 = vpop.eup %96  ;;  %v56_v26 = vadd.f32 1.0, %v95_v23 }
  0x3a   :  { %v99_v27 = vpop.eup %98  ;;  %100 = vrsqrt.f32 %v55_v24  ;;  %v57_v28 = vadd.f32 1.0, %v97_v25 }
  0x3b   :  { %102 = vrsqrt.f32 %v56_v26  ;;  %v58_v29 = vadd.f32 1.0, %v99_v27 }
  0x3c   :  { %104 = vrsqrt.f32 %v57_v28 }
  0x3d   :  { %106 = vrsqrt.f32 %v58_v29 }
  0x44   :  { %v101_v31 = vpop.eup %100 }
  0x45   :  { %v103_v32 = vpop.eup %102  ;;  %v64_v33 = vmul.f32 %v101_v31, %v63_v30 }
  0x46   :  { %v105_v34 = vpop.eup %104  ;;  %v65_v35 = vmul.f32 %v103_v32, %v63_v30 }
  0x47   :  { %v107_v36 = vpop.eup %106  ;;  %68 = vst [vmem:[#allocation7] sm:$0xff] %v64_v33  ;;  %v66_v37 = vmul.f32 %v105_v34, %v63_v30 }
  0x48   :  { %69 = vst [vmem:[#allocation7 + $0x8] sm:$0xff] %v65_v35  ;;  %v67_v38 = vmul.f32 %v107_v36, %v63_v30 }
  0x49   :  { %70 = vst [vmem:[#allocation7 + $0x10] sm:$0xff] %v66_v37 }
  0x4a   :  { %71 = vst [vmem:[#allocation7 + $0x18] sm:$0xff] %v67_v38 }
  0x4b   :  { %151 = shalt.err (!%p148_p1)
}
  0x4c   :  { %s152_s9 = scalar_lea.hbm %s224_s2, 512 }
  0x4d   :  { %p153_p2 = scmp.ne.s32.totalorder %s224_s2, %s152_s9  ;;  %p156_p3 = scmp.lt.u32.totalorder %s152_s9, %s224_s2 }
  0x4f   :  { %p158_p4 = pnand %p156_p3, %p153_p2 }
  0x51   :  { %161 = shalt.err (!%p158_p4)
}
  0x52   :  { %81 = dma.vmem_to_hbm [thread:$0]  %s79_s5, 512, %s224_s2, [#allocation6]  }
  0x53   :  { %166 = dma.done.wait [#allocation6], 512  }
  0x54   :  { %167 = vsyncadd [#allocation6], 4294966784 }
  0x55   :  { %85 = vsyncpa [#allocation5], 1 }
  0x56   :  { %86 = vsyncpa [#allocation6], 1 }

</bundles_post_ra>
